<compile_context>
chip_gen: v5e
topology: v5e:2x2
jax: 0.10.0
libtpu: 0.0.40
codegen_flags: <defaults>
</compile_context>

<pallas_src>
import functools
from math import factorial, sqrt

import numpy as np

import jax
import jax.numpy as jnp
from jax.experimental import pallas as pl
from jax.experimental.pallas import tpu as pltpu


def _round_up(x, m):
    return ((x + m - 1) // m) * m


# ----------------------------------------------------------------------------
# Clebsch-Gordan coefficient <l1 m1 ; l2 m2 | l m> (complex SH, Condon-Shortley)
# ----------------------------------------------------------------------------
def clebsch_gordan(l1, m1, l2, m2, l, m):
    if m1 + m2 != m:
        return 0.0
    if not (abs(l1 - l2) <= l <= l1 + l2):
        return 0.0
    if abs(m1) > l1 or abs(m2) > l2 or abs(m) > l:
        return 0.0
    f = factorial
    pref = sqrt((2 * l + 1) * f(l1 + l2 - l) * f(l1 - l2 + l) * f(-l1 + l2 + l)
                / f(l1 + l2 + l + 1))
    pref *= sqrt(f(l + m) * f(l - m) * f(l1 - m1) * f(l1 + m1)
                 * f(l2 - m2) * f(l2 + m2))
    kmin = max(0, l2 - l - m1, l1 - l + m2)
    kmax = min(l1 + l2 - l, l1 - m1, l2 + m2)
    s = 0.0
    for k in range(kmin, kmax + 1):
        s += ((-1.0) ** k) / (f(k) * f(l1 + l2 - l - k) * f(l1 - m1 - k)
                              * f(l2 + m2 - k) * f(l - l2 + m1 + k)
                              * f(l - l1 - m2 + k))
    return pref * s


# ----------------------------------------------------------------------------
# Build the dense CG tensor C[o, i, j] implementing the fCG forward contraction
# ----------------------------------------------------------------------------
def build_cg_tensor(maxL, taus):
    taus = np.asarray(taus, dtype=np.int64)
    degrees = 1 + 2 * np.arange(maxL + 1)
    cum_taus = np.concatenate([[0], (taus * degrees).cumsum()])

    new_tau = np.zeros(maxL + 1, dtype=np.int64)
    for l1 in range(maxL + 1):
        for l2 in range(l1 + 1):
            for l in range(l1 - l2, min(maxL, l1 + l2) + 1):
                new_tau[l] += taus[l1] * taus[l2]
    cum_new_tau = np.concatenate([[0], (new_tau * degrees).cumsum()])

    N = int(cum_taus[-1])
    O = int(cum_new_tau[-1])
    C = np.zeros((O, N, N), dtype=np.float64)

    chan_off = np.zeros(maxL + 1, dtype=np.int64)
    for l1 in range(maxL + 1):
        for l2 in range(l1 + 1):
            for l in range(l1 - l2, min(maxL, l1 + l2) + 1):
                base = int(chan_off[l])
                for t1 in range(int(taus[l1])):
                    for t2 in range(int(taus[l2])):
                        oc = base + t1 * int(taus[l2]) + t2
                        for m in range(-l, l + 1):
                            o_idx = int(cum_new_tau[l]) + oc * (2 * l + 1) + (l + m)
                            for m1 in range(max(-l1, m - l2), min(l1, m + l2) + 1):
                                m2 = m - m1
                                i_idx = int(cum_taus[l1]) + t1 * (2 * l1 + 1) + (l1 + m1)
                                j_idx = int(cum_taus[l2]) + t2 * (2 * l2 + 1) + (l2 + m2)
                                C[o_idx, i_idx, j_idx] += clebsch_gordan(l1, m1, l2, m2, l, m)
                chan_off[l] += taus[l1] * taus[l2]
    return C, cum_taus, cum_new_tau, N, O


# ----------------------------------------------------------------------------
# Pallas kernel: single lane-dense MXU matmul per batch tile
#   p_ref : (2, tile_b, P_pad)  stacked [real; imag] pair products
#   w_ref : (P_pad, O_pad)      flattened CG weights (VMEM resident)
#   o_ref : (2, tile_b, O_pad)  stacked [real; imag] outputs
# ----------------------------------------------------------------------------
def cg_kernel(p_ref, w_ref, o_ref, *, tile_b, o_pad):
    p_pad = p_ref.shape[-1]
    # Leading-dim collapse, lane dim unchanged -> no-copy relayout.
    p2 = p_ref[...].reshape(2 * tile_b, p_pad)            # (2*tile_b, P_pad)
    t = jnp.dot(p2, w_ref[...], preferred_element_type=jnp.float32)
    # Split the leading sublane dim back out (lane dim unchanged -> no copy).
    o_ref[...] = t.reshape(2, tile_b, o_pad)


class FCGModulePallas:
    """Pallas re-implementation of fCGModule.forward (inference path)."""

    def __init__(self, maxL, taus, max_tile_b=256, use_bf16=False):
        assert max_tile_b % 8 == 0, "batch tile must be a multiple of 8 (sublane)"
        self.maxL = maxL
        self.taus = np.asarray(taus, dtype=np.int64)
        self.max_tile_b = int(max_tile_b)
        self.use_bf16 = bool(use_bf16)

        C, cum_taus, cum_new_tau, N, O = build_cg_tensor(maxL, self.taus)
        self.C = C                          # kept for the numpy reference check
        self.cum_taus = cum_taus
        self.cum_new_tau = cum_new_tau
        self.N, self.O = N, O
        self.P = N * N
        self.P_pad = _round_up(self.P, 128)   # matmul K dim (pair index), lane-dense
        self.O_pad = _round_up(O, 128)        # output lane dim (256 at toy size)

        # W_flat[(j*N + i), o] = C[o, i, j], zero-padded on the pair and o axes.
        W = np.zeros((self.P_pad, self.O_pad), dtype=np.float32)
        W[:self.P, :O] = np.transpose(C, (2, 1, 0)).reshape(self.P, O).astype(np.float32)
        w_dtype = jnp.bfloat16 if self.use_bf16 else jnp.float32
        self.W = jnp.asarray(W, dtype=w_dtype)   # ~384 KiB f32 at toy size; VMEM resident

    def __call__(self, activations):
        B, N, two = activations.shape
        assert N == self.N and two == 2
        P, P_pad, O, O_pad = self.P, self.P_pad, self.O, self.O_pad

        # Large batch tile, but keep >= 2 grid steps where possible so the
        # 'parallel' axis can shard across the 2 TensorCores on v7x.
        tile_b = min(self.max_tile_b, max(8, _round_up(max(B // 2, 1), 8)))
        B_pad = _round_up(B, tile_b)

        ar = activations[..., 0].astype(jnp.float32)        # (B, N)
        ai = activations[..., 1].astype(jnp.float32)

        # Complex pair products p[b, j*N + i] = a[b, j] * a[b, i], formed in
        # the wrapper (N is tiny), then padded to lane-dense (2, B_pad, P_pad).
        pr = (ar[:, :, None] * ar[:, None, :] - ai[:, :, None] * ai[:, None, :]).reshape(B, P)
        pi = (ar[:, :, None] * ai[:, None, :] + ai[:, :, None] * ar[:, None, :]).reshape(B, P)
        p = jnp.stack([pr, pi], axis=0)                      # (2, B, P)
        p = jnp.pad(p, ((0, 0), (0, B_pad - B), (0, P_pad - P)))
        if self.use_bf16:
            p = p.astype(jnp.bfloat16)

        kernel = functools.partial(cg_kernel, tile_b=tile_b, o_pad=O_pad)

        out = pl.pallas_call(
            kernel,
            out_shape=jax.ShapeDtypeStruct((2, B_pad, O_pad), jnp.float32),
            grid=(B_pad // tile_b,),
            in_specs=[
                # stacked real/imag pair products, one DMA stream per step
                pl.BlockSpec((2, tile_b, P_pad), lambda b: (0, b, 0)),
                # constant index_map -> CG weights stay resident in VMEM
                # (pl.Buffered(1) would drop the second buffer; at 384 KiB it
                #  is not worth the compile-compat risk here)
                pl.BlockSpec((P_pad, O_pad), lambda b: (0, 0)),
            ],
            out_specs=pl.BlockSpec((2, tile_b, O_pad), lambda b: (0, b, 0)),
            compiler_params=pltpu.CompilerParams(
                dimension_semantics=("parallel",),           # megacore on v7x
                vmem_limit_bytes=32 * 1024 * 1024),          # headroom on v5e (16 MiB default)
        )(p, self.W)

        # Module API: (B, O, 2) interleaved real/imag, assembled outside the
        # kernel so the kernel stores stay lane-dense.
        return jnp.stack([out[0, :B, :O], out[1, :B, :O]], axis=-1)


def reference_forward(activations_np, C):
    """Pure numpy (float64) reference of the CG forward."""
    a = (activations_np[..., 0].astype(np.float64)
         + 1j * activations_np[..., 1].astype(np.float64))
    out = np.einsum('oij,bi,bj->bo', C, a, a)
    return np.stack([out.real, out.imag], axis=-1)


if __name__ == "__main__":
    maxL = 2
    taus = np.array([2, 2, 2], dtype=np.int64)

    mod = FCGModulePallas(maxL, taus)        # f32 weights: preserves 2e-3 tolerance

    # B=12 -> tile_b=8, B_pad=16, grid=(2,): exercises the batch grid, the
    # parallel dimension semantics and the padding/slicing paths at small size.
    B = 12
    key = jax.random.PRNGKey(0)
    activations = jax.random.normal(key, (B, mod.N, 2), dtype=jnp.float32)

    out = jax.block_until_ready(mod(activations))

    assert out.shape == (B, int(mod.cum_new_tau[-1]), 2)
    ref = reference_forward(np.asarray(activations), mod.C)
    np.testing.assert_allclose(np.asarray(out), ref, rtol=2e-3, atol=2e-3)

    print("KERNEL_OK")
</pallas_src>

<mosaic_0001>
module attributes {stable_mosaic.version = 11 : i64} {
  func.func @cg_kernel(%arg0: i32, %arg1: memref<2x8x384xf32, #tpu.memory_space<vmem>>, %arg2: memref<384x256xf32, #tpu.memory_space<vmem>>, %arg3: memref<2x8x256xf32, #tpu.memory_space<vmem>>) attributes {dimension_semantics = [#tpu.dimension_semantics<parallel>], iteration_bounds = array<i64: 2>, scalar_prefetch = 0 : i64, scratch_operands = 0 : i64, tpu.core_type = #tpu.core_type<tc>, window_params = [{transform_indices = @transform_0, window_bounds = array<i64: 2, 8, 384>}, {pipeline_mode = #tpu.pipeline_mode<synchronous>, transform_indices = @transform_1, window_bounds = array<i64: 384, 256>}, {transform_indices = @transform_2, window_bounds = array<i64: 2, 8, 256>}]} {
    %c0 = arith.constant 0 : index
    %c0_0 = arith.constant 0 : index
    %c0_1 = arith.constant 0 : index
    %0 = vector.load %arg1[%c0, %c0_0, %c0_1] : memref<2x8x384xf32, #tpu.memory_space<vmem>>, vector<2x8x384xf32>
    %1 = vector.shape_cast %0 : vector<2x8x384xf32> to vector<16x384xf32>
    %c0_2 = arith.constant 0 : index
    %c0_3 = arith.constant 0 : index
    %2 = vector.load %arg2[%c0_2, %c0_3] : memref<384x256xf32, #tpu.memory_space<vmem>>, vector<384x256xf32>
    %cst = arith.constant dense<0.000000e+00> : vector<16x256xf32>
    %3 = tpu.matmul %1, %2, %cst {dimension_numbers = #tpu.dot_dimension_numbers<[1], [0], [0], [1], [0, 0, 1, 1], [], []>} : vector<16x384xf32>, vector<384x256xf32>, vector<16x256xf32> -> vector<16x256xf32>
    %4 = vector.shape_cast %3 : vector<16x256xf32> to vector<2x8x256xf32>
    %c0_4 = arith.constant 0 : index
    %c0_5 = arith.constant 0 : index
    %c0_6 = arith.constant 0 : index
    %5 = vector.load %arg3[%c0_4, %c0_5, %c0_6] : memref<2x8x256xf32, #tpu.memory_space<vmem>>, vector<2x8x256xf32>
    tpu.vector_store %arg3[%c0_4, %c0_5, %c0_6], %4 {strides = array<i32>} : memref<2x8x256xf32, #tpu.memory_space<vmem>>, vector<2x8x256xf32>,
    return
  }
  func.func @transform_0(%arg0: i32) -> (i32, i32, i32) {
    %c0_i32 = arith.constant 0 : i32
    %c0_i32_0 = arith.constant 0 : i32
    %c0_i32_1 = arith.constant 0 : i32
    return %c0_i32, %arg0, %c0_i32_0 : i32, i32, i32
  }
  func.func @transform_1(%arg0: i32) -> (i32, i32) {
    %c0_i32 = arith.constant 0 : i32
    %c0_i32_0 = arith.constant 0 : i32
    %c0_i32_1 = arith.constant 0 : i32
    return %c0_i32, %c0_i32_0 : i32, i32
  }
  func.func @transform_2(%arg0: i32) -> (i32, i32, i32) {
    %c0_i32 = arith.constant 0 : i32
    %c0_i32_0 = arith.constant 0 : i32
    %c0_i32_1 = arith.constant 0 : i32
    return %c0_i32, %arg0, %c0_i32_0 : i32, i32, i32
  }
}

</mosaic_0001>

<bundles_post_ra>
// kernel: tpu_custom_call.1
= control target key start
LH: loop header
LB: loop body
LE: loop exit
PB: predicated region body
PF: predicated region fallthrough
CT: control target
= control target key end

     0   :  { %7 = vsyncpa [#allocation3], 0  ;;  %s945_s0 = inlined_call_operand.hbm [shape: f32[2,16,384], index: 0, kind: input, shape index: {}]   ;;  %s946_s1 = inlined_call_operand.hbm [shape: f32[384,256], index: 1, kind: input, shape index: {}]   ;;  %s947_s2 = inlined_call_operand.hbm [shape: f32[2,16,256], index: 2, kind: output, shape index: {}]  }
   0x1   :  { %9 = vsyncpa [#allocation3 + $0x1], 0 }
   0x2   :  { %10 = vsyncpa [#allocation6], 0 }
   0x3   :  { %11 = vsyncpa [#allocation4], 0 }
   0x4   :  { %13 = vsyncpa [#allocation4 + $0x1], 0  ;;  %s794_s9 = smov 0   ;;  %s796_s10 = smov 0  }
   0x5   :  { %s798_s11 = smov 0   ;;  %s800_s12 = smov 0  }
   0x6 LB: > { %s815_s13 = sadd.s32 4294967295, %s768_s12   ;;  %s524_s14 = sadd.s32 4294967294, %s768_s12   ;;  %s768_s12 = sphi %s800_s12, %s957_s12   ;;  %s764_s11 = sphi %s798_s11, %s956_s11   ;;  %s760_s10 = sphi %s796_s10, %s955_s10   ;;  %s756_s9 = sphi %s794_s9, %s954_s9  }
   0x7   : > { %p39_p0 = scmp.ne.s32.totalorder %s760_s10, %s756_s9  ;;  %p40_p1 = scmp.eq.s32.totalorder %s815_s13, 0 }
   0x8   : > { %p84_p2 = scmp.eq.s32.totalorder %s815_s13, 1  ;;  %p90_p3 = scmp.eq.s32.totalorder %s524_s14, 1 }
   0x9   : > { %p824_p4 = por %p40_p1, %p39_p0  ;;  %p525_p5 = scmp.ge.s32.totalorder %s768_s12, 1 }
   0xa   : > { %p829_p6 = por %p90_p3, %p39_p0  ;;  %p97_p7 = scmp.lt.s32.totalorder %s768_s12, 3 }
   0xb   : > { %s108_s19 = sshll.u32 %s946_s1, 4  ;;  %s770_s21 = smov [#allocation5]   ;;  %s109_s19 = int_to_ptr.hbm [resolvable:$true] %s108_s19 }
   0xc   : > { %p837_p8 = pnand %p525_p5, %p97_p7  ;;  %s110_s22 = sshll.u32 %s770_s21, 4  ;;  %s111_s22 = int_to_ptr.vmem [resolvable:$true] %s110_s22 }
   0xd   : > { %s847_s23 = sadd.s32 1, %s768_s12   ;;  %s771_s24 = smov 256  }
   0xe   : > { %p581_p9 = pneg %p837_p8  ;;  %s772_s25 = smov 16  }
   0xf   : > { %s23_s26 = ssub.s32 %s768_s12, %s847_s23  ;;  %s26_s27 = sadd.s32 1, %s764_s11 }
  0x10   : > { %p582_p10 = pnand %p581_p9, %p40_p1  ;;  %p24_p12 = scmp.eq.s32.totalorder %s23_s26, 0 }
  0x11   : > { %p33_p13 = scmp.ne.s32.totalorder %s764_s11, %s760_s10  ;;  %p34_p0 = scmp.eq.s32.totalorder %s768_s12, 0 }
  0x12   : > { %584 = dma.hbm_to_vmem [thread:$0]  (!%p582_p10), %s109_s19, 12288, %s111_s22, [#allocation6], %s771_s24, %s771_s24, %s772_s25  }
  0x13   : > { %p594_p3 = scmp.lt.s32.totalorder %s768_s12, 2  ;;  %p35_p5 = por %p34_p0, %p33_p13 }
  0x14   : > { %s857_s28 = scalar_select %p24_p12, %s764_s11, %s26_s27  }
  0x15   : > { %p861_p7 = por %p84_p2, %p33_p13  ;;  %s124_s30 = sand.u32 1, %s764_s11  }
  0x16   : > { %s571_s3 = smul.u32 24, %s768_s12  ;;  %p870_p9 = pnand %p594_p3, %p35_p5 }
  0x17   : > { %s570_s4 = smul.u32 48, %s124_s30  ;;  %s125_s19 = scalar_lea.sflag [#allocation3], %s124_s30 }
  0x18   : > { %s133_s7 = scalar_lea.hbm %s945_s0, %s571_s3  ;;  %p672_p10 = pneg %p870_p9 }
  0x19   : > { %s134_s14 = sshll.u32 %s133_s7, 4  ;;  %s128_s17 = scalar_lea.vmem [#allocation2], %s570_s4  ;;  %s135_s14 = int_to_ptr.hbm [resolvable:$true] %s134_s14 }
  0x1a   : > { %s136_s18 = sshll.u32 %s128_s17, 4  ;;  %s668_s21 = sshra.s32 %s135_s14, 4  ;;  %s137_s18 = int_to_ptr.vmem [resolvable:$true] %s136_s18  ;;  %s669_s21 = int_to_ptr.hbm [resolvable:$true] %s668_s21 }
  0x1b   : > { %s670_s22 = scalar_lea.hbm %s669_s21, 48  ;;  %s675_s26 = scalar_lea.hbm %s945_s0, 96 }
  0x1c   : > { %p671_p2 = scmp.ne.s32.totalorder %s669_s21, %s670_s22  ;;  %p676_p0 = scmp.lt.s32.totalorder %s669_s21, %s945_s0 }
  0x1d   : > { %p677_p3 = scmp.lt.s32.totalorder %s675_s26, %s670_s22 }
  0x1e   : > { %p673_p12 = pnand %p672_p10, %p671_p2 }
  0x1f   : > { %p678_p5 = por %p677_p3, %p676_p0 }
  0x20   : > { %p674_p13 = pneg %p673_p12 }
  0x22   : > { %p679_p11 = pnand %p678_p5, %p674_p13 }
  0x24   : > { %682 = shalt.err (!%p679_p11)
}
  0x25   : > { %s773_s30 = smov 768   ;;  %s774_s4 = smov 384  }
  0x26   : > { %s775_s5 = smov 24   ;;  %148 = sbr.rel (%p837_p8) target bundleno = 257 (0x101), region = 28 }
  0x27   : > { %588 = dma.hbm_to_vmem [thread:$0]  (!%p870_p9), %s135_s14, 768, %s137_s18, %s125_s19, %s773_s30, %s774_s4, %s775_s5  }
  0x28   : > { %s887_s6 = sand.u32 (!%p837_p8), 1, %s760_s10  }
  0x29   : > { %s572_s7 = smul.u32 (!%p837_p8), 48, %s887_s6  ;;  %s151_s17 = scalar_lea.sflag (!%p837_p8), [#allocation3], %s887_s6 }
  0x2b   : > { %s891_s21 = scalar_lea.vmem [#allocation2], %s572_s7 }
  0x2c   : > { %743 = dma.done.wait (%p824_p4), %s151_s17, 768  }
  0x2d   : > { %745 = vsyncadd (%p824_p4), %s151_s17, 4294966528 }
  0x2e   : > { %747 = dma.done.wait (%p40_p1), [#allocation6], 12288  }
  0x2f   : > { %749 = vsyncadd (%p40_p1), [#allocation6], 4294955008  ;;  %v217_v0 = vld [vmem:[#allocation5 + $0xf0] sm:$0xff]  ;;  %v215_v2 = vld [vmem:[#allocation5 + $0xe0] sm:$0xff]  ;;  %s531_s15 = sshll.u32 %s887_s6, 5  ;;  %s537_s8 = sshll.u32 %s815_s13, 4 }
  0x30   : > { %v281_v1 = vld [vmem:[#allocation5 + $0x2f0] sm:$0xff]  ;;  %283 = vmatpush.msra.mxu0 %v217_v0  ;;  %v279_v4 = vld [vmem:[#allocation5 + $0x2e0] sm:$0xff]  ;;  %v218_v5 = vld [vmem:[#allocation5 + $0xf8] sm:$0xff]  ;;  %s180_s20 = scalar_lea.vmem [#allocation7], %s531_s15  ;;  %s437_s19 = scalar_lea.hbm %s947_s2, %s537_s8 }
  0x31   : > { %329 = vmatpush.msra.mxu2 %v281_v1  ;;  %v249_v3 = vld [vmem:[#allocation5 + $0x1f0] sm:$0xff]  ;;  %352 = vmatpush.msra.mxu3 %v218_v5  ;;  %v247_v7 = vld [vmem:[#allocation5 + $0x1e0] sm:$0xff]  ;;  %v216_v9 = vld [vmem:[#allocation5 + $0xe8] sm:$0xff]  ;;  %s438_s22 = sshll.u32 %s180_s20, 4  ;;  %s440_s24 = sshll.u32 %s437_s19, 4  ;;  %s439_s22 = int_to_ptr.vmem [resolvable:$true] %s438_s22  ;;  %s441_s24 = int_to_ptr.hbm [resolvable:$true] %s440_s24 }
  0x32   : > { %306 = vmatpush.msra.mxu1 %v249_v3  ;;  %v213_v6 = vld [vmem:[#allocation5 + $0xd0] sm:$0xff]  ;;  %284 = vmatpush.msra.mxu0 %v215_v2  ;;  %v211_v11 = vld [vmem:[#allocation5 + $0xc0] sm:$0xff]  ;;  %v214_v13 = vld [vmem:[#allocation5 + $0xd8] sm:$0xff]  ;;  %s426_s13 = scalar_lea.sflag [#allocation4], %s887_s6  ;;  %s712_s25 = sshra.s32 %s441_s24, 4  ;;  %s713_s25 = int_to_ptr.hbm [resolvable:$true] %s712_s25 }
  0x33   : > { %v277_v8 = vld [vmem:[#allocation5 + $0x2d0] sm:$0xff]  ;;  %330 = vmatpush.msra.mxu2 %v279_v4  ;;  %353 = vmatpush.msra.mxu3 %v216_v9  ;;  %v275_v12 = vld [vmem:[#allocation5 + $0x2c0] sm:$0xff]  ;;  %v212_v15 = vld [vmem:[#allocation5 + $0xc8] sm:$0xff]  ;;  %s714_s26 = scalar_lea.hbm %s713_s25, 32  ;;  %s718_s30 = scalar_lea.hbm %s947_s2, 64 }
  0x34   : > { %v245_v10 = vld [vmem:[#allocation5 + $0x1d0] sm:$0xff]  ;;  %307 = vmatpush.msra.mxu1 %v247_v7  ;;  %285 = vmatpush.msra.mxu0 %v213_v6  ;;  %v243_v14 = vld [vmem:[#allocation5 + $0x1c0] sm:$0xff]  ;;  %v210_v19 = vld [vmem:[#allocation5 + $0xb8] sm:$0xff]  ;;  %p715_p1 = scmp.ne.s32.totalorder %s713_s25, %s714_s26  ;;  %p719_p11 = scmp.lt.s32.totalorder %s713_s25, %s947_s2 }
  0x35   : > { %331 = vmatpush.msra.mxu2 %v277_v8  ;;  %354 = vmatpush.msra.mxu3 %v214_v13  ;;  %v209_v16 = vld [vmem:[#allocation5 + $0xb0] sm:$0xff]  ;;  %v207_v20 = vld [vmem:[#allocation5 + $0xa0] sm:$0xff]  ;;  %v208_v23 = vld [vmem:[#allocation5 + $0xa8] sm:$0xff]  ;;  %p720_p9 = scmp.lt.s32.totalorder %s718_s30, %s714_s26 }
  0x36   : > { %308 = vmatpush.msra.mxu1 %v245_v10  ;;  %v273_v17 = vld [vmem:[#allocation5 + $0x2b0] sm:$0xff]  ;;  %286 = vmatpush.msra.mxu0 %v211_v11  ;;  %v271_v21 = vld [vmem:[#allocation5 + $0x2a0] sm:$0xff]  ;;  %v206_v27 = vld [vmem:[#allocation5 + $0x98] sm:$0xff]  ;;  %p716_p4 = pnand %p715_p1, %p861_p7 }
  0x37   : > { %332 = vmatpush.msra.mxu2 %v275_v12  ;;  %v241_v18 = vld [vmem:[#allocation5 + $0x1b0] sm:$0xff]  ;;  %355 = vmatpush.msra.mxu3 %v212_v15  ;;  %v239_v22 = vld [vmem:[#allocation5 + $0x1a0] sm:$0xff]  ;;  %v204_v31 = vld [vmem:[#allocation5 + $0x88] sm:$0xff]  ;;  %p721_p2 = por %p720_p9, %p719_p11 }
  0x38   : > { %309 = vmatpush.msra.mxu1 %v243_v14  ;;  %287 = vmatpush.msra.mxu0 %v209_v16  ;;  %v205_v24 = vld [vmem:[#allocation5 + $0x90] sm:$0xff]  ;;  %v203_v28 = vld [vmem:[#allocation5 + $0x80] sm:$0xff]  ;;  %v202_v35 = vld [vmem:[#allocation5 + $0x78] sm:$0xff]  ;;  %p717_p8 = pneg %p716_p4 }
  0x39   : > { %333 = vmatpush.msra.mxu2 %v273_v17  ;;  %356 = vmatpush.msra.mxu3 %v210_v19  ;;  %v269_v25 = vld [vmem:[#allocation5 + $0x290] sm:$0xff]  ;;  %v267_v29 = vld [vmem:[#allocation5 + $0x280] sm:$0xff]  ;;  %v200_v39 = vld [vmem:[#allocation5 + $0x68] sm:$0xff] }
  0x3a   : > { %310 = vmatpush.msra.mxu1 %v241_v18  ;;  %288 = vmatpush.msra.mxu0 %v207_v20  ;;  %v237_v26 = vld [vmem:[#allocation5 + $0x190] sm:$0xff]  ;;  %v235_v30 = vld [vmem:[#allocation5 + $0x180] sm:$0xff]  ;;  %v198_v43 = vld [vmem:[#allocation5 + $0x58] sm:$0xff]  ;;  %p722_p10 = pnand %p721_p2, %p717_p8 }
  0x3b   : > { %334 = vmatpush.msra.mxu2 %v271_v21  ;;  %357 = vmatpush.msra.mxu3 %v208_v23  ;;  %v201_v32 = vld [vmem:[#allocation5 + $0x70] sm:$0xff]  ;;  %v199_v36 = vld [vmem:[#allocation5 + $0x60] sm:$0xff]  ;;  %v196_v47 = vld [vmem:[#allocation5 + $0x48] sm:$0xff] }
  0x3c   : > { %311 = vmatpush.msra.mxu1 %v239_v22  ;;  %289 = vmatpush.msra.mxu0 %v205_v24  ;;  %v265_v33 = vld [vmem:[#allocation5 + $0x270] sm:$0xff]  ;;  %v263_v37 = vld [vmem:[#allocation5 + $0x260] sm:$0xff]  ;;  %v194_v51 = vld [vmem:[#allocation5 + $0x38] sm:$0xff] }
  0x3d   : > { %335 = vmatpush.msra.mxu2 %v269_v25  ;;  %358 = vmatpush.msra.mxu3 %v206_v27  ;;  %v233_v34 = vld [vmem:[#allocation5 + $0x170] sm:$0xff]  ;;  %v231_v38 = vld [vmem:[#allocation5 + $0x160] sm:$0xff]  ;;  %v192_v55 = vld [vmem:[#allocation5 + $0x28] sm:$0xff] }
  0x3e   : > { %312 = vmatpush.msra.mxu1 %v237_v26  ;;  %290 = vmatpush.msra.mxu0 %v203_v28  ;;  %v197_v40 = vld [vmem:[#allocation5 + $0x50] sm:$0xff]  ;;  %v195_v44 = vld [vmem:[#allocation5 + $0x40] sm:$0xff]  ;;  %v190_v59 = vld [vmem:[#allocation5 + $0x18] sm:$0xff] }
  0x3f   : > { %336 = vmatpush.msra.mxu2 %v267_v29  ;;  %359 = vmatpush.msra.mxu3 %v204_v31  ;;  %v261_v41 = vld [vmem:[#allocation5 + $0x250] sm:$0xff]  ;;  %v259_v45 = vld [vmem:[#allocation5 + $0x240] sm:$0xff]  ;;  %v250_v62 = vld [vmem:[#allocation5 + $0x1f8] sm:$0xff] }
  0x40   : > { %313 = vmatpush.msra.mxu1 %v235_v30  ;;  %291 = vmatpush.msra.mxu0 %v201_v32  ;;  %v229_v42 = vld [vmem:[#allocation5 + $0x150] sm:$0xff]  ;;  %v227_v46 = vld [vmem:[#allocation5 + $0x140] sm:$0xff]  ;;  %v188_v0 = vld [vmem:[#allocation5 + $0x8] sm:$0xff] }
  0x41   : > { %337 = vmatpush.msra.mxu2 %v265_v33  ;;  %360 = vmatpush.msra.mxu3 %v202_v35  ;;  %v193_v48 = vld [vmem:[#allocation5 + $0x30] sm:$0xff]  ;;  %v191_v52 = vld [vmem:[#allocation5 + $0x20] sm:$0xff]  ;;  %v248_v1 = vld [vmem:[#allocation5 + $0x1e8] sm:$0xff] }
  0x42   : > { %314 = vmatpush.msra.mxu1 %v233_v34  ;;  %292 = vmatpush.msra.mxu0 %v199_v36  ;;  %v257_v49 = vld [vmem:[#allocation5 + $0x230] sm:$0xff]  ;;  %v255_v53 = vld [vmem:[#allocation5 + $0x220] sm:$0xff]  ;;  %v282_v2 = vld [vmem:[#allocation5 + $0x2f8] sm:$0xff] }
  0x43   : > { %338 = vmatpush.msra.mxu2 %v263_v37  ;;  %361 = vmatpush.msra.mxu3 %v200_v39  ;;  %v225_v50 = vld [vmem:[#allocation5 + $0x130] sm:$0xff]  ;;  %v223_v54 = vld [vmem:[#allocation5 + $0x120] sm:$0xff]  ;;  %v246_v3 = vld [vmem:[#allocation5 + $0x1d8] sm:$0xff] }
  0x44   : > { %315 = vmatpush.msra.mxu1 %v231_v38  ;;  %293 = vmatpush.msra.mxu0 %v197_v40  ;;  %v189_v56 = vld [vmem:[#allocation5 + $0x10] sm:$0xff]  ;;  %v187_v60 = vld [vmem:[#allocation5] sm:$0xff]  ;;  %v280_v4 = vld [vmem:[#allocation5 + $0x2e8] sm:$0xff] }
  0x45   : > { %339 = vmatpush.msra.mxu2 %v261_v41  ;;  %362 = vmatpush.msra.mxu3 %v198_v43  ;;  %v253_v57 = vld [vmem:[#allocation5 + $0x210] sm:$0xff]  ;;  %v251_v61 = vld [vmem:[#allocation5 + $0x200] sm:$0xff]  ;;  %v244_v5 = vld [vmem:[#allocation5 + $0x1c8] sm:$0xff] }
  0x46   : > { %316 = vmatpush.msra.mxu1 %v229_v42  ;;  %294 = vmatpush.msra.mxu0 %v195_v44  ;;  %v221_v58 = vld [vmem:[#allocation5 + $0x110] sm:$0xff]  ;;  %v219_v63 = vld [vmem:[#allocation5 + $0x100] sm:$0xff]  ;;  %v278_v6 = vld [vmem:[#allocation5 + $0x2d8] sm:$0xff] }
  0x47   : > { %340 = vmatpush.msra.mxu2 %v259_v45  ;;  %363 = vmatpush.msra.mxu3 %v196_v47  ;;  %v242_v7 = vld [vmem:[#allocation5 + $0x1b8] sm:$0xff]  ;;  %v276_v8 = vld [vmem:[#allocation5 + $0x2c8] sm:$0xff]  ;;  %v181_v15 = vld [vmem:[%s891_s21] sm:$0xff] }
  0x48   : > { %317 = vmatpush.msra.mxu1 %v227_v46  ;;  %295 = vmatpush.msra.mxu0 %v193_v48  ;;  %v240_v9 = vld [vmem:[#allocation5 + $0x1a8] sm:$0xff]  ;;  %v274_v10 = vld [vmem:[#allocation5 + $0x2b8] sm:$0xff]  ;;  %v903_v16 = vld [vmem:[%s891_s21 + $0x10] sm:$0xff] }
  0x49   : > { %341 = vmatpush.msra.mxu2 %v257_v49  ;;  %364 = vmatpush.msra.mxu3 %v194_v51  ;;  %v238_v11 = vld [vmem:[#allocation5 + $0x198] sm:$0xff]  ;;  %v272_v12 = vld [vmem:[#allocation5 + $0x2a8] sm:$0xff]  ;;  %v185_v30 = vld [vmem:[%s891_s21 + $0x20] sm:$0xff] }
  0x4a   : > { %318 = vmatpush.msra.mxu1 %v225_v50  ;;  %296 = vmatpush.msra.mxu0 %v191_v52  ;;  %v236_v13 = vld [vmem:[#allocation5 + $0x188] sm:$0xff]  ;;  %v270_v14 = vld [vmem:[#allocation5 + $0x298] sm:$0xff] }
  0x4b   : > { %342 = vmatpush.msra.mxu2 %v255_v53  ;;  %365 = vmatpush.msra.mxu3 %v192_v55  ;;  %v234_v17 = vld [vmem:[#allocation5 + $0x178] sm:$0xff]  ;;  %v268_v18 = vld [vmem:[#allocation5 + $0x288] sm:$0xff] }
  0x4c   : > { %319 = vmatpush.msra.mxu1 %v223_v54  ;;  %297 = vmatpush.msra.mxu0 %v189_v56  ;;  %v182_v19 = vld [vmem:[%s891_s21 + $0x8] sm:$0xff]  ;;  %v184_v26 = vld [vmem:[%s891_s21 + $0x18] sm:$0xff] }
  0x4d   : > { %343 = vmatpush.msra.mxu2 %v253_v57  ;;  %366 = vmatpush.msra.mxu3 %v190_v59  ;;  %v232_v20 = vld [vmem:[#allocation5 + $0x168] sm:$0xff]  ;;  %v266_v21 = vld [vmem:[#allocation5 + $0x278] sm:$0xff] }
  0x4e   : > { %320 = vmatpush.msra.mxu1 %v221_v58  ;;  %298 = vmatpush.msra.mxu0 %v187_v60  ;;  %v230_v22 = vld [vmem:[#allocation5 + $0x158] sm:$0xff]  ;;  %v264_v23 = vld [vmem:[#allocation5 + $0x268] sm:$0xff] }
  0x4f   : > { %344 = vmatpush.msra.mxu2 %v251_v61  ;;  %367 = vmatpush.msra.mxu3 %v188_v0  ;;  %v228_v24 = vld [vmem:[#allocation5 + $0x148] sm:$0xff]  ;;  %v262_v25 = vld [vmem:[#allocation5 + $0x258] sm:$0xff] }
  0x50   : > { %375 = vmatpush.msrb.mxu0 %v250_v62  ;;  %321 = vmatpush.msra.mxu1 %v219_v63  ;;  %v186_v27 = vld [vmem:[%s891_s21 + $0x28] sm:$0xff] }
  0x51   : > { %538 = vmatpush.msrb.mxu2 %v250_v62  ;;  %554 = vmatpush.msrb.mxu3 %v282_v2  ;;  %v226_v28 = vld [vmem:[#allocation5 + $0x138] sm:$0xff]  ;;  %v260_v29 = vld [vmem:[#allocation5 + $0x248] sm:$0xff] }
  0x52   : > { %376 = vmatpush.msrb.mxu0 %v248_v1  ;;  %398 = vmatpush.msrb.mxu1 %v282_v2  ;;  %v224_v31 = vld [vmem:[#allocation5 + $0x128] sm:$0xff]  ;;  %v258_v32 = vld [vmem:[#allocation5 + $0x238] sm:$0xff] }
  0x53   : > { %539 = vmatpush.msrb.mxu2 %v248_v1  ;;  %555 = vmatpush.msrb.mxu3 %v280_v4  ;;  %v222_v33 = vld [vmem:[#allocation5 + $0x118] sm:$0xff]  ;;  %v256_v34 = vld [vmem:[#allocation5 + $0x228] sm:$0xff] }
  0x54   : > { %377 = vmatpush.msrb.mxu0 %v246_v3  ;;  %399 = vmatpush.msrb.mxu1 %v280_v4  ;;  %v220_v35 = vld [vmem:[#allocation5 + $0x108] sm:$0xff]  ;;  %v254_v36 = vld [vmem:[#allocation5 + $0x218] sm:$0xff] }
  0x55   : > { %540 = vmatpush.msrb.mxu2 %v246_v3  ;;  %556 = vmatpush.msrb.mxu3 %v278_v6  ;;  %v252_v37 = vld [vmem:[#allocation5 + $0x208] sm:$0xff] }
  0x56   : > { %378 = vmatpush.msrb.mxu0 %v244_v5  ;;  %400 = vmatpush.msrb.mxu1 %v278_v6 }
  0x57   : > { %541 = vmatpush.msrb.mxu2 %v244_v5  ;;  %557 = vmatpush.msrb.mxu3 %v276_v8 }
  0x58   : > { %379 = vmatpush.msrb.mxu0 %v242_v7  ;;  %401 = vmatpush.msrb.mxu1 %v276_v8 }
  0x59   : > { %542 = vmatpush.msrb.mxu2 %v242_v7  ;;  %558 = vmatpush.msrb.mxu3 %v274_v10 }
  0x5a   : > { %380 = vmatpush.msrb.mxu0 %v240_v9  ;;  %402 = vmatpush.msrb.mxu1 %v274_v10 }
  0x5b   : > { %543 = vmatpush.msrb.mxu2 %v240_v9  ;;  %559 = vmatpush.msrb.mxu3 %v272_v12 }
  0x5c   : > { %381 = vmatpush.msrb.mxu0 %v238_v11  ;;  %403 = vmatpush.msrb.mxu1 %v272_v12 }
  0x5d   : > { %544 = vmatpush.msrb.mxu2 %v238_v11  ;;  %560 = vmatpush.msrb.mxu3 %v270_v14 }
  0x5e   : > { %382 = vmatpush.msrb.mxu0 %v236_v13  ;;  %404 = vmatpush.msrb.mxu1 %v270_v14 }
  0x5f   : > { %545 = vmatpush.msrb.mxu2 %v236_v13  ;;  %299 = vmatmul.f32.vlgmr.msra.gmra.mxu0 %v181_v15 }
  0x60   : > { %345 = vmatmul.f32.vlgmr.msra.gmra.mxu2 %v903_v16  ;;  %383 = vmatpush.msrb.mxu0 %v234_v17 }
  0x61   : > { %546 = vmatpush.msrb.mxu2 %v234_v17  ;;  %405 = vmatpush.msrb.mxu1 %v268_v18 }
  0x62   : > { %561 = vmatpush.msrb.mxu3 %v268_v18  ;;  %322 = vmatmul.f32.vlgmr.msra.gmra.mxu1 %v182_v19 }
  0x63   : > { %368 = vmatmul.f32.vlgmr.msra.gmra.mxu3 %v181_v15  ;;  %384 = vmatpush.msrb.mxu0 %v232_v20 }
  0x64   : > { %547 = vmatpush.msrb.mxu2 %v232_v20  ;;  %406 = vmatpush.msrb.mxu1 %v266_v21 }
  0x65   : > { %562 = vmatpush.msrb.mxu3 %v266_v21  ;;  %385 = vmatpush.msrb.mxu0 %v230_v22 }
  0x66   : > { %548 = vmatpush.msrb.mxu2 %v230_v22  ;;  %407 = vmatpush.msrb.mxu1 %v264_v23 }
  0x67   : > { %563 = vmatpush.msrb.mxu3 %v264_v23  ;;  %386 = vmatpush.msrb.mxu0 %v228_v24 }
  0x68   : > { %549 = vmatpush.msrb.mxu2 %v228_v24  ;;  %408 = vmatpush.msrb.mxu1 %v262_v25 }
  0x69   : > { %564 = vmatpush.msrb.mxu3 %v262_v25  ;;  %302 = vmatmul.f32.gmra.mxu0 %v184_v26 }
  0x6a   : > { %348 = vmatmul.f32.gmra.mxu2 %v186_v27  ;;  %387 = vmatpush.msrb.mxu0 %v226_v28 }
  0x6b   : > { %550 = vmatpush.msrb.mxu2 %v226_v28  ;;  %409 = vmatpush.msrb.mxu1 %v260_v29 }
  0x6c   : > { %565 = vmatpush.msrb.mxu3 %v260_v29  ;;  %325 = vmatmul.f32.gmra.mxu1 %v185_v30 }
  0x6d   : > { %371 = vmatmul.f32.gmra.mxu3 %v184_v26  ;;  %388 = vmatpush.msrb.mxu0 %v224_v31 }
  0x6e   : > { %551 = vmatpush.msrb.mxu2 %v224_v31  ;;  %410 = vmatpush.msrb.mxu1 %v258_v32 }
  0x6f   : > { %566 = vmatpush.msrb.mxu3 %v258_v32  ;;  %389 = vmatpush.msrb.mxu0 %v222_v33 }
  0x70   : > { %552 = vmatpush.msrb.mxu2 %v222_v33  ;;  %411 = vmatpush.msrb.mxu1 %v256_v34 }
  0x71   : > { %567 = vmatpush.msrb.mxu3 %v256_v34  ;;  %390 = vmatpush.msrb.mxu0 %v220_v35 }
  0x72   : > { %553 = vmatpush.msrb.mxu2 %v220_v35  ;;  %412 = vmatpush.msrb.mxu1 %v254_v36 }
  0x73   : > { %568 = vmatpush.msrb.mxu3 %v254_v36  ;;  %391 = vmatmul.f32.vlgmr.msrb.gmra.mxu0 %v182_v19 }
  0x74   : > { %394 = vmatmul.f32.vlgmr.msrb.gmra.mxu2 %v185_v30  ;;  %413 = vmatpush.msrb.mxu1 %v252_v37 }
  0x75   : > { %569 = vmatpush.msrb.mxu3 %v252_v37  ;;  %414 = vmatmul.f32.vlgmr.msrb.gmra.mxu1 %v903_v16 }
  0x76   : > { %417 = vmatmul.f32.vlgmr.msrb.gmra.mxu3 %v186_v27 }
  0xdc   : > { %v300_v38 = vpop.f32.mrf.mxu0 }
  0xdf   : > { %v323_v39 = vpop.f32.mrf.mxu1 }
  0xe0   : > { %v324_v40 = vadd.f32 %v323_v39, %v300_v38 }
  0xe3   : > { %v346_v41 = vpop.f32.mrf.mxu2 }
  0xe4   : > { %v347_v42 = vadd.f32 %v346_v41, %v324_v40 }
  0xe6   : > { %421 = vst [vmem:[%s180_s20] sm:$0xff] %v347_v42  ;;  %v369_v43 = vpop.f32.mrf.mxu3  ;;  %v303_v44 = vpop.f32.mrf.mxu0 }
  0xe9   : > { %v326_v45 = vpop.f32.mrf.mxu1 }
  0xea   : > { %v327_v46 = vadd.f32 %v326_v45, %v303_v44 }
  0xed   : > { %v349_v47 = vpop.f32.mrf.mxu2 }
  0xee   : > { %v350_v48 = vadd.f32 %v349_v47, %v327_v46 }
  0xf0   : > { %423 = vst [vmem:[%s180_s20 + $0x10] sm:$0xff] %v350_v48  ;;  %v372_v49 = vpop.f32.mrf.mxu3  ;;  %v392_v50 = vpop.f32.mrf.mxu0 }
  0xf1   : > { %v393_v51 = vadd.f32 %v392_v50, %v369_v43 }
  0xf2   : > { %v415_v52 = vpop.f32.mrf.mxu1 }
  0xf3   : > { %v416_v53 = vadd.f32 %v415_v52, %v393_v51 }
  0xf5   : > { %422 = vst [vmem:[%s180_s20 + $0x8] sm:$0xff] %v416_v53 }
  0xf7   : > { %v395_v54 = vpop.f32.mrf.mxu2 }
  0xf8   : > { %v396_v55 = vadd.f32 %v395_v54, %v372_v49 }
  0xf9   : > { %v418_v56 = vpop.f32.mrf.mxu3 }
  0xfa   : > { %v419_v57 = vadd.f32 %v418_v56, %v396_v55 }
  0xfc   : > { %424 = vst [vmem:[%s180_s20 + $0x18] sm:$0xff] %v419_v57 }
  0xfd   : > { %725 = shalt.err (!%p722_p10)
}
  0xfe   : > { %s776_s6 = smov 256   ;;  %s777_s7 = smov 512  }
  0xff   : > { %s778_s17 = smov 16  }
 0x100   : > { %579 = dma.vmem_to_hbm [thread:$0]  (%p861_p7), %s439_s22, 512, %s441_s24, %s426_s13, %s776_s6, %s777_s7, %s778_s17  }
 0x101 PF: > { %s455_s21 = sand.u32 1, %s756_s9   ;;  %p953_p12 = scmp.ge.s32.totalorder %s768_s12, 2 }
 0x102   : > { %s456_s15 = scalar_lea.sflag [#allocation4], %s455_s21 }
 0x103   : > { %p590_p13 = pnand %p953_p12, %p829_p6 }
 0x105   : > { %p591_p0 = pneg %p590_p13 }
 0x107   : > { %751 = dma.done.wait (%p591_p0), %s456_s15, 512  }
 0x108   : > { %753 = vsyncadd (%p591_p0), %s456_s15, 4294966784  ;;  %p16_p3 = scmp.ge.s32.totalorder %s847_s23, 4   ;;  %s954_s9 = smov %s760_s10 }
 0x109   : > { %s955_s10 = smov %s764_s11  ;;  %s956_s11 = smov %s857_s28 }
 0x10a   : > { %s957_s12 = smov %s847_s23  ;;  %18 = sbr.rel (!%p16_p3) target bundleno = 6 (0x6), region = 77 }
 0x10f   :  { %462 = vsyncpa [#allocation3], 1 }
 0x110   :  { %464 = vsyncpa [#allocation3 + $0x1], 1 }
 0x111   :  { %465 = vsyncpa [#allocation6], 1 }
 0x112   :  { %466 = vsyncpa [#allocation4], 1 }
 0x113   :  { %468 = vsyncpa [#allocation4 + $0x1], 1 }

</bundles_post_ra>
